<compile_context>
chip_gen: v7x
topology: tpu7x:2x2x1
jax: 0.10.0
libtpu: 0.0.40
codegen_flags: <defaults>
</compile_context>

<pallas_src>
import functools

import jax
import jax.numpy as jnp
from jax.experimental import pallas as pl
from jax.experimental.pallas import tpu as pltpu


# ---------------------------------------------------------------------------
# Fused Pallas kernel: all GCN layers + BN + final log_softmax in one body
# ---------------------------------------------------------------------------
def _fused_gcn_kernel(a_ref, x_ref, w_ref, b_ref, gamma_ref, beta_ref,
                      logp_ref, emb_ref, *, num_layers, n_valid, out_dim):
    a = a_ref[...]                                   # bf16 [Np, Np]
    h = x_ref[...]                                   # bf16 [Np, Fp]
    n_pad, f_pad = h.shape

    # Node-row validity mask (padded rows must not pollute BatchNorm statistics).
    row_ids = jax.lax.broadcasted_iota(jnp.int32, (n_pad, 1), 0)
    row_mask = row_ids < n_valid                     # [Np, 1]
    inv_n = jnp.float32(1.0 / n_valid)

    for li in range(num_layers):                     # static unroll; num_layers is small
        w = w_ref[li]                                # bf16 [Fp, Fp]
        b = b_ref[li]                                # f32  [1, Fp]

        # GCNConv hot path: H = A_hat @ (X @ W) + b  (two MXU matmuls, f32 accumulate).
        xw = jnp.dot(h, w, preferred_element_type=jnp.float32)
        hf = jnp.dot(a, xw.astype(jnp.bfloat16),
                     preferred_element_type=jnp.float32) + b

        if li < num_layers - 1:
            # Training-mode BatchNorm1d over the node axis (biased variance), f32 math.
            gamma = gamma_ref[li]                    # f32 [1, Fp]
            beta = beta_ref[li]
            hm = jnp.where(row_mask, hf, 0.0)
            mean = jnp.sum(hm, axis=0, keepdims=True) * inv_n
            cen = jnp.where(row_mask, hf - mean, 0.0)
            var = jnp.sum(cen * cen, axis=0, keepdims=True) * inv_n
            hn = (hf - mean) * jax.lax.rsqrt(var + 1e-5)
            out = hn * gamma + beta
            # Keep padded rows exactly zero; next layer consumes bf16.
            h = jnp.where(row_mask, out, 0.0).astype(jnp.bfloat16)
        else:
            # Final layer: emit embedding + masked log_softmax over the feature axis.
            emb_ref[...] = hf
            col_ids = jax.lax.broadcasted_iota(jnp.int32, (n_pad, f_pad), 1)
            col_mask = col_ids < out_dim
            z = jnp.where(col_mask, hf, -jnp.inf)
            m = jnp.max(z, axis=1, keepdims=True)
            p = jnp.where(col_mask, jnp.exp(z - m), 0.0)
            lse = jnp.log(jnp.sum(p, axis=1, keepdims=True))
            logp_ref[...] = jnp.where(col_mask, (hf - m) - lse, 0.0)


# ---------------------------------------------------------------------------
# pallas_call wrapper: pad to lane-dense shapes, cast MXU operands to bf16
# ---------------------------------------------------------------------------
def _round_up(v, m):
    return ((v + m - 1) // m) * m


def _full_spec(shape):
    nd = len(shape)
    return pl.BlockSpec(shape, lambda i, _nd=nd: (0,) * _nd)


def _pad2(m, rows, cols):
    return jnp.pad(m, ((0, rows - m.shape[0]), (0, cols - m.shape[1])))


def gcn_forward_pallas(params, x, a_hat):
    ws, bs = params["W"], params["b"]
    gammas, betas = params["gamma"], params["beta"]
    num_layers = len(ws)
    n = x.shape[0]
    out_dim = ws[-1].shape[1]

    f_pad = _round_up(max([x.shape[1]] + [w.shape[1] for w in ws]), 128)
    n_pad = _round_up(n, 16)

    a_p = _pad2(a_hat, n_pad, n_pad).astype(jnp.bfloat16)
    x_p = _pad2(x, n_pad, f_pad).astype(jnp.bfloat16)
    w_p = jnp.stack([_pad2(w, f_pad, f_pad) for w in ws]).astype(jnp.bfloat16)
    b_p = jnp.stack([_pad2(b, 1, f_pad) for b in bs]).astype(jnp.float32)
    g_p = jnp.stack([_pad2(g, 1, f_pad) for g in gammas]).astype(jnp.float32)
    be_p = jnp.stack([_pad2(b, 1, f_pad) for b in betas]).astype(jnp.float32)

    kernel = functools.partial(_fused_gcn_kernel, num_layers=num_layers,
                               n_valid=n, out_dim=out_dim)

    logp_pad, emb_pad = pl.pallas_call(
        kernel,
        out_shape=(jax.ShapeDtypeStruct((n_pad, f_pad), jnp.float32),   # log_softmax
                   jax.ShapeDtypeStruct((n_pad, f_pad), jnp.float32)),  # embedding
        grid=(1,),
        in_specs=[
            _full_spec(a_p.shape), _full_spec(x_p.shape), _full_spec(w_p.shape),
            _full_spec(b_p.shape), _full_spec(g_p.shape), _full_spec(be_p.shape),
        ],
        out_specs=(_full_spec((n_pad, f_pad)), _full_spec((n_pad, f_pad))),
        compiler_params=pltpu.CompilerParams(dimension_semantics=("arbitrary",)),
    )(a_p, x_p, w_p, b_p, g_p, be_p)

    return {"out": logp_pad[:n, :out_dim], "emb": emb_pad[:n, :out_dim]}


gcn_forward = jax.jit(gcn_forward_pallas)


# ---------------------------------------------------------------------------
# Pure-JAX reference (mirrors the bf16 cast pattern) for correctness checking
# ---------------------------------------------------------------------------
def gcn_forward_ref(params, x, a_hat):
    a = a_hat.astype(jnp.bfloat16)
    h = x.astype(jnp.bfloat16)
    num_layers = len(params["W"])
    logp = emb = None
    for li in range(num_layers):
        w = params["W"][li].astype(jnp.bfloat16)
        b = params["b"][li]
        xw = jnp.dot(h, w, preferred_element_type=jnp.float32)
        hf = jnp.dot(a, xw.astype(jnp.bfloat16),
                     preferred_element_type=jnp.float32) + b
        if li < num_layers - 1:
            mean = jnp.mean(hf, axis=0, keepdims=True)
            var = jnp.mean((hf - mean) ** 2, axis=0, keepdims=True)
            hn = (hf - mean) * jax.lax.rsqrt(var + 1e-5)
            h = (hn * params["gamma"][li] + params["beta"][li]).astype(jnp.bfloat16)
        else:
            emb = hf
            logp = jax.nn.log_softmax(hf, axis=1)
    return {"out": logp, "emb": emb}


# ---------------------------------------------------------------------------
# Glue: parameters and normalized adjacency
# ---------------------------------------------------------------------------
def init_gcn_params(key, num_layers, hidden_unit, input_dim, output_dim):
    """GCNConv: Glorot weight [Din,Dout], zero bias. BatchNorm1d: gamma=1, beta=0."""
    dims = [input_dim] + [hidden_unit] * (num_layers - 1) + [output_dim]
    params = {"W": [], "b": [], "gamma": [], "beta": []}
    keys = jax.random.split(key, num_layers)
    for li in range(num_layers):
        din, dout = dims[li], dims[li + 1]
        scale = jnp.sqrt(6.0 / (din + dout))
        params["W"].append(
            jax.random.uniform(keys[li], (din, dout), jnp.float32, -scale, scale))
        params["b"].append(jnp.zeros((1, dout), jnp.float32))
    for _ in range(num_layers - 1):
        params["gamma"].append(jnp.ones((1, hidden_unit), jnp.float32))
        params["beta"].append(jnp.zeros((1, hidden_unit), jnp.float32))
    return params


def build_normalized_adjacency(edge_index, num_nodes):
    """Dense D^{-1/2}(A+I)D^{-1/2} from edge_index [2, E] (row=src, col=dst).
    Duplicate edges count with multiplicity, like PyG's scatter-add."""
    src, dst = edge_index[0], edge_index[1]
    a = jnp.zeros((num_nodes, num_nodes), jnp.float32)
    a = a.at[dst, src].add(1.0)
    a = a + jnp.eye(num_nodes, dtype=jnp.float32)      # self-loops
    deg = jnp.sum(a, axis=1)
    dinv = jnp.where(deg > 0, 1.0 / jnp.sqrt(deg), 0.0)
    return dinv[:, None] * a * dinv[None, :]


if __name__ == "__main__":
    # Small deterministic example: 32 nodes, input_dim=16, hidden=32, output_dim=8, 3 layers.
    num_nodes = 32
    num_layers = 3
    input_dim = 16
    hidden_unit = 32
    output_dim = 8
    num_edges = 64

    key = jax.random.PRNGKey(0)
    k_x, k_e1, k_e2, k_p = jax.random.split(key, 4)

    x = jax.random.normal(k_x, (num_nodes, input_dim), jnp.float32)
    src = jax.random.randint(k_e1, (num_edges,), 0, num_nodes)
    dst = jax.random.randint(k_e2, (num_edges,), 0, num_nodes)
    edge_index = jnp.stack([src, dst], axis=0)  # [2, E]

    a_hat = build_normalized_adjacency(edge_index, num_nodes)
    params = init_gcn_params(k_p, num_layers, hidden_unit, input_dim, output_dim)

    out = gcn_forward(params, x, a_hat)
    jax.block_until_ready(out)

    assert out["out"].shape == (num_nodes, output_dim)
    assert out["emb"].shape == (num_nodes, output_dim)

    # log_softmax rows should exponentiate-sum to 1.
    row_sums = jnp.sum(jnp.exp(out["out"]), axis=1)
    assert jnp.allclose(row_sums, 1.0, atol=1e-3)

    # Match the pure-JAX (same bf16 cast pattern) reference.
    ref = gcn_forward_ref(params, x, a_hat)
    assert jnp.allclose(out["out"], ref["out"], atol=1e-1)
    assert jnp.allclose(out["emb"], ref["emb"], atol=1e-1)

    print("KERNEL_OK")
</pallas_src>

<mosaic_0001>
module attributes {stable_mosaic.version = 11 : i64} {
  func.func @_fused_gcn_kernel(%arg0: i32, %arg1: memref<32x32xbf16, #tpu.memory_space<vmem>>, %arg2: memref<32x128xbf16, #tpu.memory_space<vmem>>, %arg3: memref<3x128x128xbf16, #tpu.memory_space<vmem>>, %arg4: memref<3x1x128xf32, #tpu.memory_space<vmem>>, %arg5: memref<2x1x128xf32, #tpu.memory_space<vmem>>, %arg6: memref<2x1x128xf32, #tpu.memory_space<vmem>>, %arg7: memref<32x128xf32, #tpu.memory_space<vmem>>, %arg8: memref<32x128xf32, #tpu.memory_space<vmem>>) attributes {dimension_semantics = [#tpu.dimension_semantics<arbitrary>], iteration_bounds = array<i64: 1>, scalar_prefetch = 0 : i64, scratch_operands = 0 : i64, tpu.core_type = #tpu.core_type<tc>, window_params = [{pipeline_mode = #tpu.pipeline_mode<synchronous>, transform_indices = @transform_0, window_bounds = array<i64: 32, 32>}, {pipeline_mode = #tpu.pipeline_mode<synchronous>, transform_indices = @transform_1, window_bounds = array<i64: 32, 128>}, {pipeline_mode = #tpu.pipeline_mode<synchronous>, transform_indices = @transform_2, window_bounds = array<i64: 3, 128, 128>}, {pipeline_mode = #tpu.pipeline_mode<synchronous>, transform_indices = @transform_3, window_bounds = array<i64: 3, 1, 128>}, {pipeline_mode = #tpu.pipeline_mode<synchronous>, transform_indices = @transform_4, window_bounds = array<i64: 2, 1, 128>}, {pipeline_mode = #tpu.pipeline_mode<synchronous>, transform_indices = @transform_5, window_bounds = array<i64: 2, 1, 128>}, {pipeline_mode = #tpu.pipeline_mode<synchronous>, transform_indices = @transform_6, window_bounds = array<i64: 32, 128>}, {pipeline_mode = #tpu.pipeline_mode<synchronous>, transform_indices = @transform_7, window_bounds = array<i64: 32, 128>}]} {
    %c0 = arith.constant 0 : index
    %c0_0 = arith.constant 0 : index
    %0 = vector.load %arg1[%c0, %c0_0] : memref<32x32xbf16, #tpu.memory_space<vmem>>, vector<32x32xbf16>
    %c0_1 = arith.constant 0 : index
    %c0_2 = arith.constant 0 : index
    %1 = vector.load %arg2[%c0_1, %c0_2] : memref<32x128xbf16, #tpu.memory_space<vmem>>, vector<32x128xbf16>
    %2 = tpu.iota {dimensions = array<i32: 0>} : vector<32x1xi32>
    %c32_i32 = arith.constant 32 : i32
    %3 = vector.broadcast %c32_i32 : i32 to vector<32x1xi32>
    %4 = arith.cmpi slt, %2, %3 : vector<32x1xi32>
    %c0_3 = arith.constant 0 : index
    %c0_4 = arith.constant 0 : index
    %c0_5 = arith.constant 0 : index
    %5 = vector.load %arg3[%c0_3, %c0_4, %c0_5] : memref<3x128x128xbf16, #tpu.memory_space<vmem>>, vector<1x128x128xbf16>
    %6 = vector.shape_cast %5 : vector<1x128x128xbf16> to vector<128x128xbf16>
    %c0_6 = arith.constant 0 : index
    %c0_7 = arith.constant 0 : index
    %c0_8 = arith.constant 0 : index
    %7 = vector.load %arg4[%c0_6, %c0_7, %c0_8] : memref<3x1x128xf32, #tpu.memory_space<vmem>>, vector<1x1x128xf32>
    %8 = vector.shape_cast %7 : vector<1x1x128xf32> to vector<1x128xf32>
    %cst = arith.constant dense<0.000000e+00> : vector<32x128xf32>
    %9 = tpu.matmul %1, %6, %cst {dimension_numbers = #tpu.dot_dimension_numbers<[1], [0], [0], [1], [0, 0, 1, 1], [], []>} : vector<32x128xbf16>, vector<128x128xbf16>, vector<32x128xf32> -> vector<32x128xf32>
    %10 = arith.truncf %9 : vector<32x128xf32> to vector<32x128xbf16>
    %cst_9 = arith.constant dense<0.000000e+00> : vector<32x128xf32>
    %11 = tpu.matmul %0, %10, %cst_9 {dimension_numbers = #tpu.dot_dimension_numbers<[1], [0], [0], [1], [0, 0, 1, 1], [], []>} : vector<32x32xbf16>, vector<32x128xbf16>, vector<32x128xf32> -> vector<32x128xf32>
    %12 = vector.broadcast %8 : vector<1x128xf32> to vector<32x128xf32>
    %13 = arith.addf %11, %12 : vector<32x128xf32>
    %c0_10 = arith.constant 0 : index
    %c0_11 = arith.constant 0 : index
    %c0_12 = arith.constant 0 : index
    %14 = vector.load %arg5[%c0_10, %c0_11, %c0_12] : memref<2x1x128xf32, #tpu.memory_space<vmem>>, vector<1x1x128xf32>
    %15 = vector.shape_cast %14 : vector<1x1x128xf32> to vector<1x128xf32>
    %c0_13 = arith.constant 0 : index
    %c0_14 = arith.constant 0 : index
    %c0_15 = arith.constant 0 : index
    %16 = vector.load %arg6[%c0_13, %c0_14, %c0_15] : memref<2x1x128xf32, #tpu.memory_space<vmem>>, vector<1x1x128xf32>
    %17 = vector.shape_cast %16 : vector<1x1x128xf32> to vector<1x128xf32>
    %cst_16 = arith.constant 0.000000e+00 : f32
    %18 = vector.shape_cast %4 : vector<32x1xi1> to vector<32x1xi1>
    %19 = vector.broadcast %18 : vector<32x1xi1> to vector<32x128xi1>
    %20 = vector.broadcast %cst_16 : f32 to vector<32x128xf32>
    %21 = arith.select %19, %13, %20 : vector<32x128xi1>, vector<32x128xf32>
    %cst_17 = arith.constant dense<0.000000e+00> : vector<128xf32>
    %22 = vector.multi_reduction <add>, %21, %cst_17 [0] : vector<32x128xf32> to vector<128xf32>
    %23 = vector.shape_cast %22 : vector<128xf32> to vector<1x128xf32>
    %cst_18 = arith.constant 3.125000e-02 : f32
    %24 = vector.broadcast %cst_18 : f32 to vector<1x128xf32>
    %25 = arith.mulf %23, %24 : vector<1x128xf32>
    %26 = vector.broadcast %25 : vector<1x128xf32> to vector<32x128xf32>
    %27 = arith.subf %13, %26 : vector<32x128xf32>
    %cst_19 = arith.constant 0.000000e+00 : f32
    %28 = vector.shape_cast %4 : vector<32x1xi1> to vector<32x1xi1>
    %29 = vector.broadcast %28 : vector<32x1xi1> to vector<32x128xi1>
    %30 = vector.broadcast %cst_19 : f32 to vector<32x128xf32>
    %31 = arith.select %29, %27, %30 : vector<32x128xi1>, vector<32x128xf32>
    %32 = arith.mulf %31, %31 : vector<32x128xf32>
    %cst_20 = arith.constant dense<0.000000e+00> : vector<128xf32>
    %33 = vector.multi_reduction <add>, %32, %cst_20 [0] : vector<32x128xf32> to vector<128xf32>
    %34 = vector.shape_cast %33 : vector<128xf32> to vector<1x128xf32>
    %cst_21 = arith.constant 3.125000e-02 : f32
    %35 = vector.broadcast %cst_21 : f32 to vector<1x128xf32>
    %36 = arith.mulf %34, %35 : vector<1x128xf32>
    %37 = vector.broadcast %25 : vector<1x128xf32> to vector<32x128xf32>
    %38 = arith.subf %13, %37 : vector<32x128xf32>
    %cst_22 = arith.constant 9.99999974E-6 : f32
    %39 = vector.broadcast %cst_22 : f32 to vector<1x128xf32>
    %40 = arith.addf %36, %39 : vector<1x128xf32>
    %41 = math.rsqrt %40 : vector<1x128xf32>
    %42 = vector.broadcast %41 : vector<1x128xf32> to vector<32x128xf32>
    %43 = arith.mulf %38, %42 : vector<32x128xf32>
    %44 = vector.broadcast %15 : vector<1x128xf32> to vector<32x128xf32>
    %45 = arith.mulf %43, %44 : vector<32x128xf32>
    %46 = vector.broadcast %17 : vector<1x128xf32> to vector<32x128xf32>
    %47 = arith.addf %45, %46 : vector<32x128xf32>
    %cst_23 = arith.constant 0.000000e+00 : f32
    %48 = vector.shape_cast %4 : vector<32x1xi1> to vector<32x1xi1>
    %49 = vector.broadcast %48 : vector<32x1xi1> to vector<32x128xi1>
    %50 = vector.broadcast %cst_23 : f32 to vector<32x128xf32>
    %51 = arith.select %49, %47, %50 : vector<32x128xi1>, vector<32x128xf32>
    %52 = arith.truncf %51 : vector<32x128xf32> to vector<32x128xbf16>
    %c1 = arith.constant 1 : index
    %c0_24 = arith.constant 0 : index
    %c0_25 = arith.constant 0 : index
    %53 = vector.load %arg3[%c1, %c0_24, %c0_25] : memref<3x128x128xbf16, #tpu.memory_space<vmem>>, vector<1x128x128xbf16>
    %54 = vector.shape_cast %53 : vector<1x128x128xbf16> to vector<128x128xbf16>
    %c1_26 = arith.constant 1 : index
    %c0_27 = arith.constant 0 : index
    %c0_28 = arith.constant 0 : index
    %55 = vector.load %arg4[%c1_26, %c0_27, %c0_28] : memref<3x1x128xf32, #tpu.memory_space<vmem>>, vector<1x1x128xf32>
    %56 = vector.shape_cast %55 : vector<1x1x128xf32> to vector<1x128xf32>
    %cst_29 = arith.constant dense<0.000000e+00> : vector<32x128xf32>
    %57 = tpu.matmul %52, %54, %cst_29 {dimension_numbers = #tpu.dot_dimension_numbers<[1], [0], [0], [1], [0, 0, 1, 1], [], []>} : vector<32x128xbf16>, vector<128x128xbf16>, vector<32x128xf32> -> vector<32x128xf32>
    %58 = arith.truncf %57 : vector<32x128xf32> to vector<32x128xbf16>
    %cst_30 = arith.constant dense<0.000000e+00> : vector<32x128xf32>
    %59 = tpu.matmul %0, %58, %cst_30 {dimension_numbers = #tpu.dot_dimension_numbers<[1], [0], [0], [1], [0, 0, 1, 1], [], []>} : vector<32x32xbf16>, vector<32x128xbf16>, vector<32x128xf32> -> vector<32x128xf32>
    %60 = vector.broadcast %56 : vector<1x128xf32> to vector<32x128xf32>
    %61 = arith.addf %59, %60 : vector<32x128xf32>
    %c1_31 = arith.constant 1 : index
    %c0_32 = arith.constant 0 : index
    %c0_33 = arith.constant 0 : index
    %62 = vector.load %arg5[%c1_31, %c0_32, %c0_33] : memref<2x1x128xf32, #tpu.memory_space<vmem>>, vector<1x1x128xf32>
    %63 = vector.shape_cast %62 : vector<1x1x128xf32> to vector<1x128xf32>
    %c1_34 = arith.constant 1 : index
    %c0_35 = arith.constant 0 : index
    %c0_36 = arith.constant 0 : index
    %64 = vector.load %arg6[%c1_34, %c0_35, %c0_36] : memref<2x1x128xf32, #tpu.memory_space<vmem>>, vector<1x1x128xf32>
    %65 = vector.shape_cast %64 : vector<1x1x128xf32> to vector<1x128xf32>
    %cst_37 = arith.constant 0.000000e+00 : f32
    %66 = vector.shape_cast %4 : vector<32x1xi1> to vector<32x1xi1>
    %67 = vector.broadcast %66 : vector<32x1xi1> to vector<32x128xi1>
    %68 = vector.broadcast %cst_37 : f32 to vector<32x128xf32>
    %69 = arith.select %67, %61, %68 : vector<32x128xi1>, vector<32x128xf32>
    %cst_38 = arith.constant dense<0.000000e+00> : vector<128xf32>
    %70 = vector.multi_reduction <add>, %69, %cst_38 [0] : vector<32x128xf32> to vector<128xf32>
    %71 = vector.shape_cast %70 : vector<128xf32> to vector<1x128xf32>
    %cst_39 = arith.constant 3.125000e-02 : f32
    %72 = vector.broadcast %cst_39 : f32 to vector<1x128xf32>
    %73 = arith.mulf %71, %72 : vector<1x128xf32>
    %74 = vector.broadcast %73 : vector<1x128xf32> to vector<32x128xf32>
    %75 = arith.subf %61, %74 : vector<32x128xf32>
    %cst_40 = arith.constant 0.000000e+00 : f32
    %76 = vector.shape_cast %4 : vector<32x1xi1> to vector<32x1xi1>
    %77 = vector.broadcast %76 : vector<32x1xi1> to vector<32x128xi1>
    %78 = vector.broadcast %cst_40 : f32 to vector<32x128xf32>
    %79 = arith.select %77, %75, %78 : vector<32x128xi1>, vector<32x128xf32>
    %80 = arith.mulf %79, %79 : vector<32x128xf32>
    %cst_41 = arith.constant dense<0.000000e+00> : vector<128xf32>
    %81 = vector.multi_reduction <add>, %80, %cst_41 [0] : vector<32x128xf32> to vector<128xf32>
    %82 = vector.shape_cast %81 : vector<128xf32> to vector<1x128xf32>
    %cst_42 = arith.constant 3.125000e-02 : f32
    %83 = vector.broadcast %cst_42 : f32 to vector<1x128xf32>
    %84 = arith.mulf %82, %83 : vector<1x128xf32>
    %85 = vector.broadcast %73 : vector<1x128xf32> to vector<32x128xf32>
    %86 = arith.subf %61, %85 : vector<32x128xf32>
    %cst_43 = arith.constant 9.99999974E-6 : f32
    %87 = vector.broadcast %cst_43 : f32 to vector<1x128xf32>
    %88 = arith.addf %84, %87 : vector<1x128xf32>
    %89 = math.rsqrt %88 : vector<1x128xf32>
    %90 = vector.broadcast %89 : vector<1x128xf32> to vector<32x128xf32>
    %91 = arith.mulf %86, %90 : vector<32x128xf32>
    %92 = vector.broadcast %63 : vector<1x128xf32> to vector<32x128xf32>
    %93 = arith.mulf %91, %92 : vector<32x128xf32>
    %94 = vector.broadcast %65 : vector<1x128xf32> to vector<32x128xf32>
    %95 = arith.addf %93, %94 : vector<32x128xf32>
    %cst_44 = arith.constant 0.000000e+00 : f32
    %96 = vector.shape_cast %4 : vector<32x1xi1> to vector<32x1xi1>
    %97 = vector.broadcast %96 : vector<32x1xi1> to vector<32x128xi1>
    %98 = vector.broadcast %cst_44 : f32 to vector<32x128xf32>
    %99 = arith.select %97, %95, %98 : vector<32x128xi1>, vector<32x128xf32>
    %100 = arith.truncf %99 : vector<32x128xf32> to vector<32x128xbf16>
    %c2 = arith.constant 2 : index
    %c0_45 = arith.constant 0 : index
    %c0_46 = arith.constant 0 : index
    %101 = vector.load %arg3[%c2, %c0_45, %c0_46] : memref<3x128x128xbf16, #tpu.memory_space<vmem>>, vector<1x128x128xbf16>
    %102 = vector.shape_cast %101 : vector<1x128x128xbf16> to vector<128x128xbf16>
    %c2_47 = arith.constant 2 : index
    %c0_48 = arith.constant 0 : index
    %c0_49 = arith.constant 0 : index
    %103 = vector.load %arg4[%c2_47, %c0_48, %c0_49] : memref<3x1x128xf32, #tpu.memory_space<vmem>>, vector<1x1x128xf32>
    %104 = vector.shape_cast %103 : vector<1x1x128xf32> to vector<1x128xf32>
    %cst_50 = arith.constant dense<0.000000e+00> : vector<32x128xf32>
    %105 = tpu.matmul %100, %102, %cst_50 {dimension_numbers = #tpu.dot_dimension_numbers<[1], [0], [0], [1], [0, 0, 1, 1], [], []>} : vector<32x128xbf16>, vector<128x128xbf16>, vector<32x128xf32> -> vector<32x128xf32>
    %106 = arith.truncf %105 : vector<32x128xf32> to vector<32x128xbf16>
    %cst_51 = arith.constant dense<0.000000e+00> : vector<32x128xf32>
    %107 = tpu.matmul %0, %106, %cst_51 {dimension_numbers = #tpu.dot_dimension_numbers<[1], [0], [0], [1], [0, 0, 1, 1], [], []>} : vector<32x32xbf16>, vector<32x128xbf16>, vector<32x128xf32> -> vector<32x128xf32>
    %108 = vector.broadcast %104 : vector<1x128xf32> to vector<32x128xf32>
    %109 = arith.addf %107, %108 : vector<32x128xf32>
    %c0_52 = arith.constant 0 : index
    %c0_53 = arith.constant 0 : index
    %110 = vector.load %arg8[%c0_52, %c0_53] : memref<32x128xf32, #tpu.memory_space<vmem>>, vector<32x128xf32>
    tpu.vector_store %arg8[%c0_52, %c0_53], %109 {strides = array<i32>} : memref<32x128xf32, #tpu.memory_space<vmem>>, vector<32x128xf32>,
    %111 = tpu.iota {dimensions = array<i32: 1>} : vector<32x128xi32>
    %c8_i32 = arith.constant 8 : i32
    %112 = vector.broadcast %c8_i32 : i32 to vector<32x128xi32>
    %113 = arith.cmpi slt, %111, %112 : vector<32x128xi32>
    %cst_54 = arith.constant 0xFF800000 : f32
    %114 = vector.broadcast %cst_54 : f32 to vector<32x128xf32>
    %115 = arith.select %113, %109, %114 : vector<32x128xi1>, vector<32x128xf32>
    %cst_55 = arith.constant dense<0xFF800000> : vector<32xf32>
    %116 = vector.multi_reduction <maximumf>, %115, %cst_55 [1] : vector<32x128xf32> to vector<32xf32>
    %117 = vector.shape_cast %116 : vector<32xf32> to vector<32x1xf32>
    %118 = vector.broadcast %117 : vector<32x1xf32> to vector<32x128xf32>
    %119 = arith.subf %115, %118 : vector<32x128xf32>
    %120 = math.exp %119 : vector<32x128xf32>
    %cst_56 = arith.constant 0.000000e+00 : f32
    %121 = vector.broadcast %cst_56 : f32 to vector<32x128xf32>
    %122 = arith.select %113, %120, %121 : vector<32x128xi1>, vector<32x128xf32>
    %cst_57 = arith.constant dense<0.000000e+00> : vector<32xf32>
    %123 = vector.multi_reduction <add>, %122, %cst_57 [1] : vector<32x128xf32> to vector<32xf32>
    %124 = vector.shape_cast %123 : vector<32xf32> to vector<32x1xf32>
    %125 = math.log %124 : vector<32x1xf32>
    %126 = vector.broadcast %117 : vector<32x1xf32> to vector<32x128xf32>
    %127 = arith.subf %109, %126 : vector<32x128xf32>
    %128 = vector.broadcast %125 : vector<32x1xf32> to vector<32x128xf32>
    %129 = arith.subf %127, %128 : vector<32x128xf32>
    %cst_58 = arith.constant 0.000000e+00 : f32
    %130 = vector.broadcast %cst_58 : f32 to vector<32x128xf32>
    %131 = arith.select %113, %129, %130 : vector<32x128xi1>, vector<32x128xf32>
    %c0_59 = arith.constant 0 : index
    %c0_60 = arith.constant 0 : index
    %132 = vector.load %arg7[%c0_59, %c0_60] : memref<32x128xf32, #tpu.memory_space<vmem>>, vector<32x128xf32>
    tpu.vector_store %arg7[%c0_59, %c0_60], %131 {strides = array<i32>} : memref<32x128xf32, #tpu.memory_space<vmem>>, vector<32x128xf32>,
    return
  }
  func.func @transform_0(%arg0: i32) -> (i32, i32) {
    %c0_i32 = arith.constant 0 : i32
    %c0_i32_0 = arith.constant 0 : i32
    %c0_i32_1 = arith.constant 0 : i32
    return %c0_i32, %c0_i32_0 : i32, i32
  }
  func.func @transform_1(%arg0: i32) -> (i32, i32) {
    %c0_i32 = arith.constant 0 : i32
    %c0_i32_0 = arith.constant 0 : i32
    %c0_i32_1 = arith.constant 0 : i32
    return %c0_i32, %c0_i32_0 : i32, i32
  }
  func.func @transform_2(%arg0: i32) -> (i32, i32, i32) {
    %c0_i32 = arith.constant 0 : i32
    %c0_i32_0 = arith.constant 0 : i32
    %c0_i32_1 = arith.constant 0 : i32
    %c0_i32_2 = arith.constant 0 : i32
    return %c0_i32, %c0_i32_0, %c0_i32_1 : i32, i32, i32
  }
  func.func @transform_3(%arg0: i32) -> (i32, i32, i32) {
    %c0_i32 = arith.constant 0 : i32
    %c0_i32_0 = arith.constant 0 : i32
    %c0_i32_1 = arith.constant 0 : i32
    %c0_i32_2 = arith.constant 0 : i32
    return %c0_i32, %c0_i32_0, %c0_i32_1 : i32, i32, i32
  }
  func.func @transform_4(%arg0: i32) -> (i32, i32, i32) {
    %c0_i32 = arith.constant 0 : i32
    %c0_i32_0 = arith.constant 0 : i32
    %c0_i32_1 = arith.constant 0 : i32
    %c0_i32_2 = arith.constant 0 : i32
    return %c0_i32, %c0_i32_0, %c0_i32_1 : i32, i32, i32
  }
  func.func @transform_5(%arg0: i32) -> (i32, i32, i32) {
    %c0_i32 = arith.constant 0 : i32
    %c0_i32_0 = arith.constant 0 : i32
    %c0_i32_1 = arith.constant 0 : i32
    %c0_i32_2 = arith.constant 0 : i32
    return %c0_i32, %c0_i32_0, %c0_i32_1 : i32, i32, i32
  }
  func.func @transform_6(%arg0: i32) -> (i32, i32) {
    %c0_i32 = arith.constant 0 : i32
    %c0_i32_0 = arith.constant 0 : i32
    %c0_i32_1 = arith.constant 0 : i32
    return %c0_i32, %c0_i32_0 : i32, i32
  }
  func.func @transform_7(%arg0: i32) -> (i32, i32) {
    %c0_i32 = arith.constant 0 : i32
    %c0_i32_0 = arith.constant 0 : i32
    %c0_i32_1 = arith.constant 0 : i32
    return %c0_i32, %c0_i32_0 : i32, i32
  }
}

</mosaic_0001>

<bundles_post_ra>
// kernel: gcn_forward_pallas.1
= control target key start
LH: loop header
LB: loop body
LE: loop exit
PB: predicated region body
PF: predicated region fallthrough
CT: control target
= control target key end

     0   :  { %vm187_vm0 = vcmask 261120   ;;  %s1287_s2 = inlined_call_operand.vmem [shape: bf16[3,128,128], index: 2, kind: input, shape index: {}]   ;;  %s1288_s1 = inlined_call_operand.vmem [shape: bf16[32,128], index: 1, kind: input, shape index: {}]   ;;  %s1289_s0 = inlined_call_operand.vmem [shape: bf16[32,32], index: 0, kind: input, shape index: {}]   ;;  %s1290_s3 = inlined_call_operand.vmem [shape: f32[3,1,128], index: 3, kind: input, shape index: {}]   ;;  %s1291_s4 = inlined_call_operand.vmem [shape: f32[2,1,128], index: 4, kind: input, shape index: {}]   ;;  %s1292_s5 = inlined_call_operand.vmem [shape: f32[2,1,128], index: 5, kind: input, shape index: {}]   ;;  %s1293_s7 = inlined_call_operand.vmem [shape: f32[32,128], index: 7, kind: output, shape index: {1}]   ;;  %s1294_s6 = inlined_call_operand.vmem [shape: f32[32,128], index: 6, kind: output, shape index: {0}]  }
   0x1   :  { %v1017_v0 = vld [vmem:[%s1287_s2] sm:$0xff]   ;;  %v1018_v1 = vld [vmem:[%s1287_s2 + $0x8] sm:$0xff]   ;;  %v1019_v2 = vld [vmem:[%s1287_s2 + $0x10] sm:$0xff]  }
   0x2   :  { %933 = vmatprep.subr.bf16.mxu0 %v1017_v0  ;;  %v1020_v3 = vld [vmem:[%s1287_s2 + $0x18] sm:$0xff]   ;;  %v1025_v4 = vld [vmem:[%s1288_s1] sm:$0xff]   ;;  %v1022_v6 = vld [vmem:[%s1287_s2 + $0x28] sm:$0xff]  }
   0x3   :  { %934 = vmatpush3.bf16.msra.mxu0 %v1017_v0  ;;  %v1021_v5 = vld [vmem:[%s1287_s2 + $0x20] sm:$0xff]   ;;  %949 = vmatprep.mubr.bf16.mxu0 %v1025_v4  ;;  %v1023_v7 = vld [vmem:[%s1287_s2 + $0x30] sm:$0xff]   ;;  %v1024_v8 = vld [vmem:[%s1287_s2 + $0x38] sm:$0xff]  }
   0x4   :  { %935 = vmatprep.subr.bf16.mxu0 %v1018_v1  ;;  %v1026_v9 = vld [vmem:[%s1288_s1 + $0x8] sm:$0xff]   ;;  %v1138_v10 = vld [vmem:[%s1289_s0] sm:$0xff]   ;;  %v1031_v20 = vld [vmem:[%s1287_s2 + $0x50] sm:$0xff]  }
   0x5   :  { %957 = vmatprep.mubr.msk.bf16.mxu1 %vm187_vm0, %v1138_v10  ;;  %v1145_v17 = vld [vmem:[%s1289_s0 + $0x8] sm:$0xff]   ;;  %v1029_v18 = vld [vmem:[%s1287_s2 + $0x40] sm:$0xff]   ;;  %v1032_v21 = vld [vmem:[%s1287_s2 + $0x58] sm:$0xff]  }
   0x6   :  { %v1030_v19 = vld [vmem:[%s1287_s2 + $0x48] sm:$0xff]   ;;  %v1033_v22 = vld [vmem:[%s1287_s2 + $0x60] sm:$0xff]   ;;  %v1035_v24 = vld [vmem:[%s1287_s2 + $0x70] sm:$0xff]  }
   0x7   :  { %936 = vmatpush3.bf16.msra.mxu0 %v1018_v1  ;;  %v1034_v23 = vld [vmem:[%s1287_s2 + $0x68] sm:$0xff]   ;;  %v1036_v25 = vld [vmem:[%s1287_s2 + $0x78] sm:$0xff]   ;;  %v824_v27 = vld [vmem:[%s1290_s3] ss:$0 sm:$0xff] }
   0x8   :  { %937 = vmatprep.subr.bf16.mxu0 %v1019_v2  ;;  %v829_v1 = vld [vmem:[%s1291_s4] ss:$0 sm:$0xff] }
   0xb   :  { %938 = vmatpush3.bf16.msra.mxu0 %v1019_v2 }
   0xc   :  { %939 = vmatprep.subr.bf16.mxu0 %v1020_v3 }
   0xf   :  { %940 = vmatpush3.bf16.msra.mxu0 %v1020_v3 }
  0x10   :  { %941 = vmatprep.subr.bf16.mxu0 %v1021_v5 }
  0x13   :  { %942 = vmatpush3.bf16.msra.mxu0 %v1021_v5 }
  0x14   :  { %943 = vmatprep.subr.bf16.mxu0 %v1022_v6 }
  0x17   :  { %944 = vmatpush3.bf16.msra.mxu0 %v1022_v6  ;;  %v830_v6 = vld [vmem:[%s1292_s5] ss:$0 sm:$0xff] }
  0x18   :  { %945 = vmatprep.subr.bf16.mxu0 %v1023_v7 }
  0x1b   :  { %946 = vmatpush3.bf16.msra.mxu0 %v1023_v7 }
  0x1c   :  { %947 = vmatprep.subr.bf16.mxu0 %v1024_v8 }
  0x1f   :  { %948 = vmatpush3.bf16.msra.mxu0 %v1024_v8 }
  0x22   :  { %950 = vmatmul.mubr.bf16.vlgmr.msra.gmra.mrb[0].mxu0 %v1026_v9 }
  0xf5   :  { %v951_v11 = vpop.f32.mrb[0].mxu0 }
  0xf6   :  { %v154_v12 = vpop.f32.mrb[1].mxu0 }
  0xf7   :  { %v952_v13 = vpop.f32.mrb[2].mxu0 }
  0xf8   :  { %v170_v14 = vpack.c.bf16 %v952_v13, %v951_v11  ;;  %v157_v15 = vpop.f32.mrb[3].mxu0 }
  0xf9   :  { %v169_v16 = vpack.c.bf16 %v157_v15, %v154_v12 }
  0xfb   :  { %953 = vmatprep.subr.bf16.mxu1 %v169_v16 }
  0xfc   :  { %954 = vmatpush3.bf16.msra.mxu1 %v169_v16 }
  0xfd   :  { %955 = vmatprep.subr.bf16.mxu1 %v170_v14 }
 0x100   :  { %956 = vmatpush3.bf16.msra.mxu1 %v170_v14 }
 0x101   :  { %961 = vmatprep.subr.bf16.mxu1 %v1029_v18 }
 0x103   :  { %958 = vmatmul.mubr.msk.bf16.vlgmr.msra.gmra.mrb[0].mxu1 %vm187_vm0, %v1145_v17 }
 0x104   :  { %962 = vmatpush3.bf16.msra.mxu1 %v1029_v18 }
 0x105   :  { %963 = vmatprep.subr.bf16.mxu1 %v1030_v19 }
 0x108   :  { %964 = vmatpush3.bf16.msra.mxu1 %v1030_v19 }
 0x109   :  { %965 = vmatprep.subr.bf16.mxu1 %v1031_v20 }
 0x10c   :  { %966 = vmatpush3.bf16.msra.mxu1 %v1031_v20 }
 0x10d   :  { %967 = vmatprep.subr.bf16.mxu1 %v1032_v21 }
 0x110   :  { %968 = vmatpush3.bf16.msra.mxu1 %v1032_v21 }
 0x111   :  { %969 = vmatprep.subr.bf16.mxu1 %v1033_v22 }
 0x114   :  { %970 = vmatpush3.bf16.msra.mxu1 %v1033_v22 }
 0x115   :  { %971 = vmatprep.subr.bf16.mxu1 %v1034_v23 }
 0x118   :  { %972 = vmatpush3.bf16.msra.mxu1 %v1034_v23 }
 0x119   :  { %973 = vmatprep.subr.bf16.mxu1 %v1035_v24 }
 0x11c   :  { %974 = vmatpush3.bf16.msra.mxu1 %v1035_v24 }
 0x11d   :  { %975 = vmatprep.subr.bf16.mxu1 %v1036_v25 }
 0x120   :  { %976 = vmatpush3.bf16.msra.mxu1 %v1036_v25  ;;  %v1037_v25 = vld [vmem:[%s1287_s2 + $0x80] sm:$0xff]  }
 0x121   :  { %989 = vmatprep.subr.bf16.mxu0 %v1037_v25 }
 0x122   :  { %990 = vmatpush3.bf16.msra.mxu0 %v1037_v25 }
 0x1d6   :  { %v959_v26 = vpop.f32.mrb[0].mxu1 }
 0x1d7   :  { %v228_v28 = vpop.f32.mrb[1].mxu1  ;;  %v237_v33 = vadd.f32 %v959_v26, %v824_v27  ;;  %v1038_v26 = vld [vmem:[%s1287_s2 + $0x88] sm:$0xff]  }
 0x1d8   :  { %v960_v29 = vpop.f32.mrb[2].mxu1  ;;  %v229_v31 = vadd.f32 %v824_v27, %v228_v28  ;;  %991 = vmatprep.subr.bf16.mxu0 %v1038_v26  ;;  %v1041_v28 = vld [vmem:[%s1287_s2 + $0xa0] sm:$0xff]  }
 0x1d9   :  { %v231_v30 = vpop.f32.mrb[3].mxu1  ;;  %v240_v35 = vadd.f32 %v960_v29, %v824_v27  ;;  %992 = vmatpush3.bf16.msra.mxu0 %v1038_v26  ;;  %v1042_v29 = vld [vmem:[%s1287_s2 + $0xa8] sm:$0xff]  }
 0x1da   :  { %v232_v32 = vadd.f32 %v824_v27, %v231_v30  ;;  %v1039_v27 = vld [vmem:[%s1287_s2 + $0x90] sm:$0xff]  }
 0x1db   :  { %993 = vmatprep.subr.bf16.mxu0 %v1039_v27  ;;  %v1043_v30 = vld [vmem:[%s1287_s2 + $0xb0] sm:$0xff]  }
 0x1dc   :  { %v257_v34 = vadd.f32 %v232_v32, %v229_v31 }
 0x1dd   :  { %994 = vmatpush3.bf16.msra.mxu0 %v1039_v27 }
 0x1de   :  { %v258_v36 = vadd.f32 %v257_v34, %v237_v33 }
 0x1e0   :  { %v259_v37 = vadd.f32 %v258_v36, %v240_v35 }
 0x1e2   :  { %v260_v38 = vrot.slane %v259_v37, 4 }
 0x1e4   :  { %v261_v39 = vadd.f32 %v260_v38, %v259_v37 }
 0x1e6   :  { %v262_v40 = vrot.slane %v261_v39, 2 }
 0x1e8   :  { %v263_v41 = vadd.f32 %v262_v40, %v261_v39 }
 0x1ea   :  { %v264_v42 = vrot.slane %v263_v41, 1 }
 0x1ec   :  { %v265_v43 = vadd.f32 %v264_v42, %v263_v41 }
 0x1ee   :  { %v266_v44 = vmul.f32 0.03125, %v265_v43 }
 0x1f0   :  { %v267_v45 = vsub.f32 %v229_v31, %v266_v44  ;;  %v268_v46 = vsub.f32 %v232_v32, %v266_v44  ;;  %v269_v47 = vsub.f32 %v237_v33, %v266_v44  ;;  %v270_v48 = vsub.f32 %v240_v35, %v266_v44  ;;  %v1044_v31 = vld [vmem:[%s1287_s2 + $0xb8] sm:$0xff]   ;;  %v856_v33 = vld [vmem:[%s1290_s3 + $0x1] ss:$0 sm:$0xff] }
 0x1f2   :  { %v275_v49 = vmul.f32 %v267_v45, %v267_v45  ;;  %v276_v50 = vmul.f32 %v268_v46, %v268_v46  ;;  %v277_v51 = vmul.f32 %v269_v47, %v269_v47  ;;  %v278_v53 = vmul.f32 %v270_v48, %v270_v48 }
 0x1f4   :  { %v279_v52 = vadd.f32 %v276_v50, %v275_v49 }
 0x1f6   :  { %v280_v54 = vadd.f32 %v279_v52, %v277_v51 }
 0x1f8   :  { %v281_v55 = vadd.f32 %v280_v54, %v278_v53 }
 0x1fa   :  { %v282_v56 = vrot.slane %v281_v55, 4 }
 0x1fc   :  { %v283_v57 = vadd.f32 %v282_v56, %v281_v55 }
 0x1fe   :  { %v284_v58 = vrot.slane %v283_v57, 2 }
 0x200   :  { %v285_v59 = vadd.f32 %v284_v58, %v283_v57 }
 0x202   :  { %v286_v60 = vrot.slane %v285_v59, 1 }
 0x204   :  { %v287_v61 = vadd.f32 %v286_v60, %v285_v59 }
 0x206   :  { %v288_v62 = vmul.f32 0.03125, %v287_v61 }
 0x208   :  { %v289_v63 = vadd.f32 1e-05, %v288_v62 }
 0x20a   :  { %1045 = vrsqrt.f32 %v289_v63 }
 0x214   :  { %v1046_v0 = vpop.eup %1045 }
 0x215   :  { %v292_v2 = vmul.f32 %v1046_v0, %v268_v46  ;;  %v291_v3 = vmul.f32 %v1046_v0, %v267_v45  ;;  %v293_v4 = vmul.f32 %v1046_v0, %v269_v47  ;;  %v294_v5 = vmul.f32 %v1046_v0, %v270_v48 }
 0x217   :  { %v302_v7 = vmul.f32 %v829_v1, %v292_v2  ;;  %v301_v8 = vmul.f32 %v829_v1, %v291_v3  ;;  %v303_v9 = vmul.f32 %v829_v1, %v293_v4  ;;  %v304_v11 = vmul.f32 %v829_v1, %v294_v5 }
 0x219   :  { %v311_v12 = vadd.f32 %v830_v6, %v301_v8  ;;  %v312_v13 = vadd.f32 %v830_v6, %v302_v7  ;;  %v313_v14 = vadd.f32 %v830_v6, %v303_v9  ;;  %v314_v15 = vadd.f32 %v830_v6, %v304_v11  ;;  %v861_v7 = vld [vmem:[%s1291_s4 + $0x1] ss:$0 sm:$0xff] }
 0x21b   :  { %v319_v16 = vpack.c.bf16 %v312_v13, %v311_v12  ;;  %v320_v18 = vpack.c.bf16 %v314_v15, %v313_v14  ;;  %v862_v13 = vld [vmem:[%s1292_s5 + $0x1] ss:$0 sm:$0xff] }
 0x21d   :  { %977 = vmatprep.mubr.bf16.mxu1 %v319_v16 }
 0x21e   :  { %978 = vmatmul.mubr.bf16.vlgmr.msra.gmra.mrb[4].mxu1 %v320_v18 }
 0x21f   :  { %985 = vmatprep.mubr.msk.bf16.mxu1 %vm187_vm0, %v1138_v10 }
 0x2f1   :  { %v979_v19 = vpop.f32.mrb[4].mxu1 }
 0x2f2   :  { %v422_v20 = vpop.f32.mrb[5].mxu1 }
 0x2f3   :  { %v980_v21 = vpop.f32.mrb[6].mxu1 }
 0x2f4   :  { %v438_v22 = vpack.c.bf16 %v980_v21, %v979_v19  ;;  %v425_v23 = vpop.f32.mrb[7].mxu1 }
 0x2f5   :  { %v437_v24 = vpack.c.bf16 %v425_v23, %v422_v20 }
 0x2f7   :  { %981 = vmatprep.subr.bf16.mxu1 %v437_v24 }
 0x2f8   :  { %982 = vmatpush3.bf16.msra.mxu1 %v437_v24 }
 0x2f9   :  { %983 = vmatprep.subr.bf16.mxu1 %v438_v22 }
 0x2fc   :  { %984 = vmatpush3.bf16.msra.mxu1 %v438_v22 }
 0x2ff   :  { %986 = vmatmul.mubr.msk.bf16.vlgmr.msra.gmra.mrb[8].mxu1 %vm187_vm0, %v1145_v17 }
 0x300   :  { %1013 = vmatprep.mubr.msk.bf16.mxu1 %vm187_vm0, %v1138_v10  ;;  %v1040_v10 = vld [vmem:[%s1287_s2 + $0x98] sm:$0xff]  }
 0x301   :  { %995 = vmatprep.subr.bf16.mxu0 %v1040_v10 }
 0x302   :  { %996 = vmatpush3.bf16.msra.mxu0 %v1040_v10 }
 0x303   :  { %997 = vmatprep.subr.bf16.mxu0 %v1041_v28 }
 0x306   :  { %998 = vmatpush3.bf16.msra.mxu0 %v1041_v28 }
 0x307   :  { %999 = vmatprep.subr.bf16.mxu0 %v1042_v29 }
 0x30a   :  { %1000 = vmatpush3.bf16.msra.mxu0 %v1042_v29 }
 0x30b   :  { %1001 = vmatprep.subr.bf16.mxu0 %v1043_v30 }
 0x30e   :  { %1002 = vmatpush3.bf16.msra.mxu0 %v1043_v30  ;;  %v743_v30 = vlaneseq }
 0x30f   :  { %1003 = vmatprep.subr.bf16.mxu0 %v1044_v31 }
 0x312   :  { %1004 = vmatpush3.bf16.msra.mxu0 %v1044_v31  ;;  %v1223_v31 = vand.u32 127, %v743_v30 }
 0x314   :  { %vm745_vm1 = vcmp.lt.s32.totalorder %v1223_v31, 8 }
 0x3d2   :  { %v987_v32 = vpop.f32.mrb[8].mxu1 }
 0x3d3   :  { %v479_v34 = vpop.f32.mrb[9].mxu1  ;;  %v488_v39 = vadd.f32 %v987_v32, %v856_v33  ;;  %v888_v32 = vld [vmem:[%s1290_s3 + $0x2] ss:$0 sm:$0xff] }
 0x3d4   :  { %v988_v35 = vpop.f32.mrb[10].mxu1  ;;  %v480_v37 = vadd.f32 %v856_v33, %v479_v34 }
 0x3d5   :  { %v482_v36 = vpop.f32.mrb[11].mxu1  ;;  %v491_v41 = vadd.f32 %v988_v35, %v856_v33 }
 0x3d6   :  { %v483_v38 = vadd.f32 %v856_v33, %v482_v36 }
 0x3d8   :  { %v502_v40 = vadd.f32 %v483_v38, %v480_v37 }
 0x3da   :  { %v503_v42 = vadd.f32 %v502_v40, %v488_v39 }
 0x3dc   :  { %v504_v43 = vadd.f32 %v503_v42, %v491_v41 }
 0x3de   :  { %v505_v44 = vrot.slane %v504_v43, 4 }
 0x3e0   :  { %v506_v45 = vadd.f32 %v505_v44, %v504_v43 }
 0x3e2   :  { %v507_v46 = vrot.slane %v506_v45, 2 }
 0x3e4   :  { %v508_v47 = vadd.f32 %v507_v46, %v506_v45 }
 0x3e6   :  { %v509_v48 = vrot.slane %v508_v47, 1 }
 0x3e8   :  { %v510_v49 = vadd.f32 %v509_v48, %v508_v47 }
 0x3ea   :  { %v511_v50 = vmul.f32 0.03125, %v510_v49 }
 0x3ec   :  { %v512_v51 = vsub.f32 %v480_v37, %v511_v50  ;;  %v513_v52 = vsub.f32 %v483_v38, %v511_v50  ;;  %v514_v53 = vsub.f32 %v488_v39, %v511_v50  ;;  %v515_v54 = vsub.f32 %v491_v41, %v511_v50 }
 0x3ee   :  { %v520_v55 = vmul.f32 %v512_v51, %v512_v51  ;;  %v521_v56 = vmul.f32 %v513_v52, %v513_v52  ;;  %v522_v57 = vmul.f32 %v514_v53, %v514_v53  ;;  %v523_v59 = vmul.f32 %v515_v54, %v515_v54 }
 0x3f0   :  { %v524_v58 = vadd.f32 %v521_v56, %v520_v55 }
 0x3f2   :  { %v525_v60 = vadd.f32 %v524_v58, %v522_v57 }
 0x3f4   :  { %v526_v61 = vadd.f32 %v525_v60, %v523_v59 }
 0x3f6   :  { %v527_v62 = vrot.slane %v526_v61, 4 }
 0x3f8   :  { %v528_v63 = vadd.f32 %v527_v62, %v526_v61 }
 0x3fa   :  { %v529_v0 = vrot.slane %v528_v63, 2 }
 0x3fc   :  { %v530_v1 = vadd.f32 %v529_v0, %v528_v63 }
 0x3fe   :  { %v531_v2 = vrot.slane %v530_v1, 1 }
 0x400   :  { %v532_v3 = vadd.f32 %v531_v2, %v530_v1 }
 0x402   :  { %v533_v4 = vmul.f32 0.03125, %v532_v3 }
 0x404   :  { %v534_v5 = vadd.f32 1e-05, %v533_v4 }
 0x406   :  { %1047 = vrsqrt.f32 %v534_v5 }
 0x410   :  { %v1048_v6 = vpop.eup %1047 }
 0x411   :  { %v537_v8 = vmul.f32 %v1048_v6, %v513_v52  ;;  %v536_v9 = vmul.f32 %v1048_v6, %v512_v51  ;;  %v538_v11 = vmul.f32 %v1048_v6, %v514_v53  ;;  %v539_v12 = vmul.f32 %v1048_v6, %v515_v54 }
 0x413   :  { %v547_v14 = vmul.f32 %v861_v7, %v537_v8  ;;  %v546_v15 = vmul.f32 %v861_v7, %v536_v9  ;;  %v548_v16 = vmul.f32 %v861_v7, %v538_v11  ;;  %v549_v18 = vmul.f32 %v861_v7, %v539_v12 }
 0x415   :  { %v556_v19 = vadd.f32 %v862_v13, %v546_v15  ;;  %v557_v20 = vadd.f32 %v862_v13, %v547_v14  ;;  %v558_v21 = vadd.f32 %v862_v13, %v548_v16  ;;  %v559_v22 = vadd.f32 %v862_v13, %v549_v18 }
 0x417   :  { %v564_v23 = vpack.c.bf16 %v557_v20, %v556_v19  ;;  %v565_v24 = vpack.c.bf16 %v559_v22, %v558_v21 }
 0x419   :  { %1005 = vmatprep.mubr.bf16.mxu0 %v564_v23 }
 0x41a   :  { %1006 = vmatmul.mubr.bf16.vlgmr.msra.gmra.mrb[4].mxu0 %v565_v24 }
 0x4ed   :  { %v1007_v25 = vpop.f32.mrb[4].mxu0 }
 0x4ee   :  { %v667_v26 = vpop.f32.mrb[5].mxu0 }
 0x4ef   :  { %v1008_v27 = vpop.f32.mrb[6].mxu0 }
 0x4f0   :  { %v683_v10 = vpack.c.bf16 %v1008_v27, %v1007_v25  ;;  %v670_v28 = vpop.f32.mrb[7].mxu0 }
 0x4f1   :  { %v682_v29 = vpack.c.bf16 %v670_v28, %v667_v26 }
 0x4f3   :  { %1009 = vmatprep.subr.bf16.mxu1 %v682_v29 }
 0x4f4   :  { %1010 = vmatpush3.bf16.msra.mxu1 %v682_v29 }
 0x4f5   :  { %1011 = vmatprep.subr.bf16.mxu1 %v683_v10 }
 0x4f8   :  { %1012 = vmatpush3.bf16.msra.mxu1 %v683_v10 }
 0x4fb   :  { %1014 = vmatmul.mubr.msk.bf16.vlgmr.msra.gmra.mrb[12].mxu1 %vm187_vm0, %v1145_v17 }
 0x5ce   :  { %v1015_v33 = vpop.f32.mrb[12].mxu1 }
 0x5cf   :  { %v1229_v34 = vadd.f32 %v1015_v33, %v888_v32  ;;  %v724_v35 = vpop.f32.mrb[13].mxu1 }
 0x5d0   :  { %v725_v36 = vadd.f32 %v888_v32, %v724_v35  ;;  %v1016_v37 = vpop.f32.mrb[14].mxu1 }
 0x5d1   :  { %741 = vst [vmem:[%s1293_s7 + $0x10] sm:$0xff] %v1229_v34  ;;  %v1235_v17 = vadd.f32 %v1016_v37, %v888_v32  ;;  %v727_v38 = vpop.f32.mrb[15].mxu1  ;;  %v748_v39 = vsel %vm745_vm1, %v1229_v34, -inf }
 0x5d2   :  { %739 = vst [vmem:[%s1293_s7] sm:$0xff] %v725_v36  ;;  %v728_v40 = vadd.f32 %v888_v32, %v727_v38  ;;  %754 = vmax.xlane.f32.xlu1 %v748_v39  ;;  %v746_v41 = vsel %vm745_vm1, %v725_v36, -inf }
 0x5d3   :  { %742 = vst [vmem:[%s1293_s7 + $0x18] sm:$0xff] %v1235_v17  ;;  %750 = vmax.xlane.f32.xlu0 %v746_v41  ;;  %v749_v42 = vsel %vm745_vm1, %v1235_v17, -inf }
 0x5d4   :  { %740 = vst [vmem:[%s1293_s7 + $0x8] sm:$0xff] %v728_v40  ;;  %v747_v43 = vsel %vm745_vm1, %v728_v40, -inf }
 0x5d6   :  { %756 = vmax.xlane.f32.xlu1 %v749_v42 }
 0x5d7   :  { %752 = vmax.xlane.f32.xlu0 %v747_v43 }
 0x65f   :  { %v755_v44 = vpop.xlane.xlu1 %754 }
 0x660   :  { %v760_v45 = vsub.f32 %v748_v39, %v755_v44  ;;  %v751_v46 = vpop.xlane.xlu0 %750  ;;  %v792_v14 = vsub.f32 %v1229_v34, %v755_v44 }
 0x661   :  { %v758_v47 = vsub.f32 %v746_v41, %v751_v46  ;;  %v790_v5 = vsub.f32 %v725_v36, %v751_v46 }
 0x662   :  { %v766_v48 = vmul.f32 1.442695, %v760_v45 }
 0x663   :  { %v762_v49 = vmul.f32 1.442695, %v758_v47  ;;  %v757_v50 = vpop.xlane.xlu1 %756 }
 0x664   :  { %v761_v51 = vsub.f32 %v749_v42, %v757_v50  ;;  %v753_v52 = vpop.xlane.xlu0 %752  ;;  %v793_v20 = vsub.f32 %v1235_v17, %v757_v50 }
 0x665   :  { %1049 = vpow2.f32 %v762_v49  ;;  %v759_v53 = vsub.f32 %v747_v43, %v753_v52  ;;  %v791_v11 = vsub.f32 %v728_v40, %v753_v52 }
 0x666   :  { %1051 = vpow2.f32 %v766_v48  ;;  %v768_v54 = vmul.f32 1.442695, %v761_v51 }
 0x667   :  { %v764_v55 = vmul.f32 1.442695, %v759_v53 }
 0x669   :  { %1053 = vpow2.f32 %v764_v55 }
 0x66a   :  { %1055 = vpow2.f32 %v768_v54 }
 0x66f   :  { %v1050_v56 = vpop.eup %1049 }
 0x670   :  { %v770_v57 = vsel %vm745_vm1, %v1050_v56, 0.0  ;;  %v1052_v58 = vpop.eup %1051 }
 0x671   :  { %774 = vadd.xlane.f32.xlu0 %v770_v57  ;;  %v772_v60 = vsel %vm745_vm1, %v1052_v58, 0.0 }
 0x673   :  { %v1054_v59 = vpop.eup %1053 }
 0x674   :  { %v771_v61 = vsel %vm745_vm1, %v1054_v59, 0.0  ;;  %v1056_v62 = vpop.eup %1055 }
 0x675   :  { %778 = vadd.xlane.f32.xlu0 %v772_v60  ;;  %776 = vadd.xlane.f32.xlu1 %v771_v61  ;;  %v773_v63 = vsel %vm745_vm1, %v1056_v62, 0.0 }
 0x679   :  { %780 = vadd.xlane.f32.xlu1 %v773_v63 }
 0x6fe   :  { %v775_v0 = vpop.xlane.xlu0 %774 }
 0x6ff   :  { %1057 = vlog2.f32 %v775_v0 }
 0x702   :  { %v777_v1 = vpop.xlane.xlu1 %776  ;;  %v779_v2 = vpop.xlane.xlu0 %778 }
 0x703   :  { %1059 = vlog2.f32 %v777_v1 }
 0x704   :  { %1061 = vlog2.f32 %v779_v2 }
 0x706   :  { %v781_v3 = vpop.xlane.xlu1 %780 }
 0x707   :  { %1063 = vlog2.f32 %v781_v3 }
 0x709   :  { %v1058_v4 = vpop.eup %1057 }
 0x70a   :  { %v783_v6 = vmul.f32 0.6931472, %v1058_v4 }
 0x70c   :  { %v794_v7 = vsub.f32 %v790_v5, %v783_v6 }
 0x70d   :  { %v1060_v8 = vpop.eup %1059 }
 0x70e   :  { %v1062_v9 = vpop.eup %1061  ;;  %v798_v12 = vsel %vm745_vm1, %v794_v7, 0.0  ;;  %v785_v13 = vmul.f32 0.6931472, %v1060_v8 }
 0x70f   :  { %802 = vst [vmem:[%s1294_s6] sm:$0xff] %v798_v12  ;;  %v787_v15 = vmul.f32 0.6931472, %v1062_v9 }
 0x710   :  { %v795_v16 = vsub.f32 %v791_v11, %v785_v13 }
 0x711   :  { %v1064_v18 = vpop.eup %1063  ;;  %v796_v19 = vsub.f32 %v792_v14, %v787_v15 }
 0x712   :  { %v799_v21 = vsel %vm745_vm1, %v795_v16, 0.0  ;;  %v789_v22 = vmul.f32 0.6931472, %v1064_v18 }
 0x713   :  { %803 = vst [vmem:[%s1294_s6 + $0x8] sm:$0xff] %v799_v21  ;;  %v800_v23 = vsel %vm745_vm1, %v796_v19, 0.0 }
 0x714   :  { %804 = vst [vmem:[%s1294_s6 + $0x10] sm:$0xff] %v800_v23  ;;  %v797_v24 = vsub.f32 %v793_v20, %v789_v22 }
 0x716   :  { %v801_v25 = vsel %vm745_vm1, %v797_v24, 0.0 }
 0x717   :  { %805 = vst [vmem:[%s1294_s6 + $0x18] sm:$0xff] %v801_v25 }

</bundles_post_ra>
